<compile_context>
chip_gen: v5e
topology: v5e:2x2
jax: 0.10.0
libtpu: 0.0.40
codegen_flags: <defaults>
</compile_context>

<pallas_src>
import math

import jax
import jax.numpy as jnp
from jax.experimental import pallas as pl
from jax.experimental.pallas import tpu as pltpu

INPUT_DIM = 8 * 8 * 3        # 192
HIDDEN_DIM = 8 * 8 * 3 * 4   # 768
NUM_CLASSES = 100


def _gelu(x):
    # exact GELU (torch nn.GELU default, approximate='none')
    return 0.5 * x * (1.0 + jax.lax.erf(x * (1.0 / math.sqrt(2.0))))


def mlp_head_kernel(x_ref, w1_ref, b1_ref, w2_ref, b2_ref, o_ref):
    # x_ref: (tm, D_in) f32  |  w1: (D_in, H) bf16  |  b1: (1, H) f32
    # w2: (H, C_pad) bf16    |  b2: (1, C_pad) f32  |  o: (tm, C_pad) f32
    x = x_ref[...].astype(jnp.bfloat16)
    h = jnp.dot(x, w1_ref[...], preferred_element_type=jnp.float32) + b1_ref[...]
    h = _gelu(h)
    out = jnp.dot(h.astype(jnp.bfloat16), w2_ref[...],
                  preferred_element_type=jnp.float32) + b2_ref[...]
    o_ref[...] = out.astype(o_ref.dtype)


def prepare_params(w1, b1, w2, b2):
    """One-time parameter prep (run OUTSIDE the per-step hot path).

    Casts matmul weights to bf16 and zero-pads the class dimension to a
    multiple of 128 lanes so the kernel's output store is lane-dense.
    Returns (w1p, b1p, w2p, b2p, num_classes).
    """
    D_in, H = w1.shape
    H2, C = w2.shape
    assert D_in == INPUT_DIM and H == H2
    Cp = ((C + 127) // 128) * 128

    w1p = jnp.asarray(w1, jnp.bfloat16)
    b1p = jnp.asarray(b1, jnp.float32).reshape(1, H)
    w2p = jnp.pad(jnp.asarray(w2, jnp.float32), ((0, 0), (0, Cp - C))).astype(jnp.bfloat16)
    b2p = jnp.pad(jnp.asarray(b2, jnp.float32).reshape(1, C), ((0, 0), (0, Cp - C)))
    return w1p, b1p, w2p, b2p, C


def mlp_head(x, w1p, b1p, w2p, b2p, num_classes, *, block_rows=512):
    """Forward pass. x: (B, INPUT_DIM) f32; params from prepare_params.

    Returns (B, num_classes) f32.
    """
    B, D_in = x.shape
    Cp = w2p.shape[1]

    # Row tile: single full-array block for small B; 512-row tiles (multiple
    # of 8 sublanes) otherwise. Ragged final block is handled by Pallas
    # (out-of-bounds output rows are not written), so no x padding/copy.
    tm = B if B <= block_rows else block_rows
    grid = (pl.cdiv(B, tm),)

    # Constant operands: whole array resident in VMEM, fetched once,
    # not double-buffered (they never change across grid steps).
    const_vmem = pl.BlockSpec(memory_space=pltpu.MemorySpace.VMEM)

    out = pl.pallas_call(
        mlp_head_kernel,
        out_shape=jax.ShapeDtypeStruct((B, Cp), jnp.float32),
        grid_spec=pltpu.PrefetchScalarGridSpec(
            num_scalar_prefetch=0,
            grid=grid,
            in_specs=[
                pl.BlockSpec((tm, D_in), lambda i: (i, 0)),   # x row tile (pipelined)
                const_vmem,                                    # w1
                const_vmem,                                    # b1
                const_vmem,                                    # w2 (class-padded)
                const_vmem,                                    # b2 (class-padded)
            ],
            out_specs=pl.BlockSpec((tm, Cp), lambda i: (i, 0)),
        ),
        compiler_params=pltpu.CompilerParams(
            dimension_semantics=("parallel",)),
    )(x, w1p, b1p, w2p, b2p)

    return out[:, :num_classes]


def reference(x, w1, b1, w2, b2):
    """Pure-JAX f32 reference mirroring the PyTorch forward (eval mode)."""
    w1f = w1.astype(jnp.float32)
    w2f = w2.astype(jnp.float32)
    h = x @ w1f + b1
    h = 0.5 * h * (1.0 + jax.lax.erf(h / jnp.sqrt(2.0)))
    return h @ w2f + b2


if __name__ == "__main__":
    B = 2
    key = jax.random.PRNGKey(0)
    k1, k2, k3, k4, k5 = jax.random.split(key, 5)

    x = jax.random.normal(k1, (B, INPUT_DIM), jnp.float32)
    w1 = jax.random.normal(k2, (INPUT_DIM, HIDDEN_DIM), jnp.float32) * 0.02
    b1 = jax.random.normal(k3, (1, HIDDEN_DIM), jnp.float32) * 0.02
    w2 = jax.random.normal(k4, (HIDDEN_DIM, NUM_CLASSES), jnp.float32) * 0.02
    b2 = jax.random.normal(k5, (1, NUM_CLASSES), jnp.float32) * 0.02

    # One-time parameter prep (bf16 cast + lane padding), outside the hot path.
    w1p, b1p, w2p, b2p, C = prepare_params(w1, b1, w2, b2)

    out = mlp_head(x, w1p, b1p, w2p, b2p, C)
    out = jax.block_until_ready(out)

    # Reference uses the same (bf16-rounded) module parameters in f32 math;
    # the only divergence is the kernel's bf16 activation casts.
    ref = reference(x, w1p.astype(jnp.float32)[:, :HIDDEN_DIM], b1p,
                    w2p.astype(jnp.float32)[:, :C], b2p[:, :C])
    err = float(jnp.max(jnp.abs(out - ref)))
    assert err < 2e-3, f"mismatch vs reference: max abs err = {err}"

    print("KERNEL_OK")
</pallas_src>

<mosaic_0001>
module attributes {stable_mosaic.version = 11 : i64} {
  func.func @mlp_head_kernel(%arg0: i32, %arg1: memref<2x192xf32, #tpu.memory_space<vmem>>, %arg2: memref<192x768xbf16, #tpu.memory_space<vmem>>, %arg3: memref<1x768xf32, #tpu.memory_space<vmem>>, %arg4: memref<768x128xbf16, #tpu.memory_space<vmem>>, %arg5: memref<1x128xf32, #tpu.memory_space<vmem>>, %arg6: memref<2x128xf32, #tpu.memory_space<vmem>>) attributes {dimension_semantics = [#tpu.dimension_semantics<parallel>], iteration_bounds = array<i64: 1>, scalar_prefetch = 0 : i64, scratch_operands = 0 : i64, tpu.core_type = #tpu.core_type<tc>, window_params = [{transform_indices = @transform_0, window_bounds = array<i64: 2, 192>}, {pipeline_mode = #tpu.pipeline_mode<synchronous>, transform_indices = @transform_1, window_bounds = array<i64: 192, 768>}, {pipeline_mode = #tpu.pipeline_mode<synchronous>, transform_indices = @transform_2, window_bounds = array<i64: 1, 768>}, {pipeline_mode = #tpu.pipeline_mode<synchronous>, transform_indices = @transform_3, window_bounds = array<i64: 768, 128>}, {pipeline_mode = #tpu.pipeline_mode<synchronous>, transform_indices = @transform_4, window_bounds = array<i64: 1, 128>}, {transform_indices = @transform_5, window_bounds = array<i64: 2, 128>}]} {
    %c0 = arith.constant 0 : index
    %c0_0 = arith.constant 0 : index
    %0 = vector.load %arg1[%c0, %c0_0] : memref<2x192xf32, #tpu.memory_space<vmem>>, vector<2x192xf32>
    %1 = arith.truncf %0 : vector<2x192xf32> to vector<2x192xbf16>
    %c0_1 = arith.constant 0 : index
    %c0_2 = arith.constant 0 : index
    %2 = vector.load %arg2[%c0_1, %c0_2] : memref<192x768xbf16, #tpu.memory_space<vmem>>, vector<192x768xbf16>
    %cst = arith.constant dense<0.000000e+00> : vector<2x768xf32>
    %3 = tpu.matmul %1, %2, %cst {dimension_numbers = #tpu.dot_dimension_numbers<[1], [0], [0], [1], [0, 0, 1, 1], [], []>} : vector<2x192xbf16>, vector<192x768xbf16>, vector<2x768xf32> -> vector<2x768xf32>
    %c0_3 = arith.constant 0 : index
    %c0_4 = arith.constant 0 : index
    %4 = vector.load %arg3[%c0_3, %c0_4] : memref<1x768xf32, #tpu.memory_space<vmem>>, vector<1x768xf32>
    %5 = vector.broadcast %4 : vector<1x768xf32> to vector<2x768xf32>
    %6 = arith.addf %3, %5 : vector<2x768xf32>
    %cst_5 = arith.constant 5.000000e-01 : f32
    %7 = vector.broadcast %cst_5 : f32 to vector<2x768xf32>
    %8 = arith.mulf %7, %6 : vector<2x768xf32>
    %cst_6 = arith.constant 0.707106769 : f32
    %9 = vector.broadcast %cst_6 : f32 to vector<2x768xf32>
    %10 = arith.mulf %6, %9 : vector<2x768xf32>
    %11 = math.erf %10 : vector<2x768xf32>
    %cst_7 = arith.constant 1.000000e+00 : f32
    %12 = vector.broadcast %cst_7 : f32 to vector<2x768xf32>
    %13 = arith.addf %12, %11 : vector<2x768xf32>
    %14 = arith.mulf %8, %13 : vector<2x768xf32>
    %15 = arith.truncf %14 : vector<2x768xf32> to vector<2x768xbf16>
    %c0_8 = arith.constant 0 : index
    %c0_9 = arith.constant 0 : index
    %16 = vector.load %arg4[%c0_8, %c0_9] : memref<768x128xbf16, #tpu.memory_space<vmem>>, vector<768x128xbf16>
    %cst_10 = arith.constant dense<0.000000e+00> : vector<2x128xf32>
    %17 = tpu.matmul %15, %16, %cst_10 {dimension_numbers = #tpu.dot_dimension_numbers<[1], [0], [0], [1], [0, 0, 1, 1], [], []>} : vector<2x768xbf16>, vector<768x128xbf16>, vector<2x128xf32> -> vector<2x128xf32>
    %c0_11 = arith.constant 0 : index
    %c0_12 = arith.constant 0 : index
    %18 = vector.load %arg5[%c0_11, %c0_12] : memref<1x128xf32, #tpu.memory_space<vmem>>, vector<1x128xf32>
    %19 = vector.broadcast %18 : vector<1x128xf32> to vector<2x128xf32>
    %20 = arith.addf %17, %19 : vector<2x128xf32>
    %c0_13 = arith.constant 0 : index
    %c0_14 = arith.constant 0 : index
    %21 = vector.load %arg6[%c0_13, %c0_14] : memref<2x128xf32, #tpu.memory_space<vmem>>, vector<2x128xf32>
    tpu.vector_store %arg6[%c0_13, %c0_14], %20 {strides = array<i32>} : memref<2x128xf32, #tpu.memory_space<vmem>>, vector<2x128xf32>,
    return
  }
  func.func @transform_0(%arg0: i32) -> (i32, i32) {
    %c0_i32 = arith.constant 0 : i32
    %c0_i32_0 = arith.constant 0 : i32
    return %arg0, %c0_i32 : i32, i32
  }
  func.func @transform_1(%arg0: i32) -> (i32, i32) {
    %c0_i32 = arith.constant 0 : i32
    %c0_i32_0 = arith.constant 0 : i32
    %c0_i32_1 = arith.constant 0 : i32
    return %c0_i32, %c0_i32_0 : i32, i32
  }
  func.func @transform_2(%arg0: i32) -> (i32, i32) {
    %c0_i32 = arith.constant 0 : i32
    %c0_i32_0 = arith.constant 0 : i32
    %c0_i32_1 = arith.constant 0 : i32
    return %c0_i32, %c0_i32_0 : i32, i32
  }
  func.func @transform_3(%arg0: i32) -> (i32, i32) {
    %c0_i32 = arith.constant 0 : i32
    %c0_i32_0 = arith.constant 0 : i32
    %c0_i32_1 = arith.constant 0 : i32
    return %c0_i32, %c0_i32_0 : i32, i32
  }
  func.func @transform_4(%arg0: i32) -> (i32, i32) {
    %c0_i32 = arith.constant 0 : i32
    %c0_i32_0 = arith.constant 0 : i32
    %c0_i32_1 = arith.constant 0 : i32
    return %c0_i32, %c0_i32_0 : i32, i32
  }
  func.func @transform_5(%arg0: i32) -> (i32, i32) {
    %c0_i32 = arith.constant 0 : i32
    %c0_i32_0 = arith.constant 0 : i32
    return %arg0, %c0_i32 : i32, i32
  }
}

</mosaic_0001>

<bundles_post_ra>
// kernel: tpu_custom_call.1
= control target key start
LH: loop header
LB: loop body
LE: loop exit
PB: predicated region body
PF: predicated region fallthrough
CT: control target
= control target key end

     0   :  { %10 = vsyncpa [#allocation3], 0  ;;  %s2494_s0 = inlined_call_operand.hbm [shape: f32[2,192], index: 0, kind: input, shape index: {}]   ;;  %s2495_s1 = inlined_call_operand.hbm [shape: bf16[192,768], index: 1, kind: input, shape index: {}]   ;;  %s2496_s2 = inlined_call_operand.hbm [shape: f32[1,768], index: 2, kind: input, shape index: {}]   ;;  %s2497_s3 = inlined_call_operand.hbm [shape: bf16[768,128], index: 3, kind: input, shape index: {}]   ;;  %s2498_s4 = inlined_call_operand.vmem [shape: f32[1,128], index: 4, kind: input, shape index: {}]   ;;  %s2499_s5 = inlined_call_operand.hbm [shape: f32[2,128], index: 5, kind: output, shape index: {}]  }
   0x1   :  { %11 = vsyncpa [#allocation6], 0 }
   0x2   :  { %12 = vsyncpa [#allocation9], 0  ;;  %s29_s20 = sshll.u32 %s2495_s1, 4  ;;  %s30_s20 = int_to_ptr.hbm [resolvable:$true] %s29_s20 }
   0x3   :  { %13 = vsyncpa [#allocation4], 0  ;;  %s2214_s21 = smov [#allocation5]   ;;  %s19_s25 = sshll.u32 %s2494_s0, 4  ;;  %s20_s25 = int_to_ptr.hbm [resolvable:$true] %s19_s25 }
   0x4   :  { %s31_s22 = sshll.u32 %s2214_s21, 4  ;;  %s2215_s26 = smov 384   ;;  %s32_s22 = int_to_ptr.vmem [resolvable:$true] %s31_s22 }
   0x5   :  { %s2216_s27 = smov 24   ;;  %s2217_s28 = smov [#allocation2]  }
   0x6   :  { %37 = dma.hbm_to_vmem [thread:$0]  %s30_s20, 9216, %s32_s22, [#allocation6], %s2215_s26, %s2215_s26, %s2216_s27  }
   0x7   :  { %s21_s29 = sshll.u32 %s2217_s28, 4  ;;  %s43_s7 = sshll.u32 %s2496_s2, 4  ;;  %s22_s29 = int_to_ptr.vmem [resolvable:$true] %s21_s29  ;;  %s44_s7 = int_to_ptr.hbm [resolvable:$true] %s43_s7 }
   0x8   :  { %24 = dma.hbm_to_vmem [thread:$0]  %s20_s25, 64, %s22_s29, [#allocation3]  }
   0x9   :  { %s53_s9 = sshll.u32 %s2497_s3, 4  ;;  %s2218_s10 = smov [#allocation7]   ;;  %s54_s9 = int_to_ptr.hbm [resolvable:$true] %s53_s9 }
   0xa   :  { %s45_s11 = sshll.u32 %s2218_s10, 4  ;;  %s2219_s0 = smov [#allocation8]   ;;  %s46_s11 = int_to_ptr.vmem [resolvable:$true] %s45_s11 }
   0xb   :  { %48 = dma.hbm_to_vmem [thread:$0]  %s44_s7, 96, %s46_s11, [#allocation6]  }
   0xc   :  { %s55_s12 = sshll.u32 %s2219_s0, 4  ;;  %s2220_s13 = smov 64   ;;  %s56_s12 = int_to_ptr.vmem [resolvable:$true] %s55_s12 }
   0xd   :  { %s2221_s14 = smov 4  }
   0xe   :  { %61 = dma.hbm_to_vmem [thread:$0]  %s54_s9, 6144, %s56_s12, [#allocation9], %s2220_s13, %s2220_s13, %s2221_s14  }
   0xf   :  { %2206 = dma.done.wait [#allocation3], 64  }
  0x10   :  { %2207 = vsyncadd [#allocation3], 4294967232 }
  0x11   :  { %2208 = dma.done.wait [#allocation6], 9312  }
  0x12   :  { %2209 = vsyncadd [#allocation6], 4294957984 }
  0x13   :  { %2210 = dma.done.wait [#allocation9], 6144  }
  0x14   :  { %2211 = vsyncadd [#allocation9], 4294961152  ;;  %v1622_v0 = vld [vmem:[#allocation5 + $0x150] sm:$0xf]  ;;  %v1989_v1 = vld [vmem:[#allocation5 + $0x164] sm:$0xf0] }
  0x15   :  { %v1718_v2 = vld [vmem:[#allocation5 + $0x210] sm:$0xf]  ;;  %v1623_v3 = vor.u32 %v1989_v1, %v1622_v0  ;;  %v2013_v4 = vld [vmem:[#allocation5 + $0x224] sm:$0xf0]  ;;  %v1986_v5 = vld [vmem:[#allocation5 + $0x154] sm:$0xf] }
  0x16   :  { %v1624_v6 = vld [vmem:[#allocation5 + $0x168] sm:$0xf0]  ;;  %v1719_v7 = vor.u32 %v2013_v4, %v1718_v2  ;;  %v2010_v9 = vld [vmem:[#allocation5 + $0x214] sm:$0xf]  ;;  %v1598_v11 = vld [vmem:[#allocation5 + $0x120] sm:$0xf] }
  0x17   :  { %v1627_v8 = vor.u32 %v1986_v5, %v1624_v6  ;;  %v1720_v10 = vld [vmem:[#allocation5 + $0x228] sm:$0xf0]  ;;  %540 = vmatpush.bf16.msra.mxu0 %v1623_v3  ;;  %v1983_v13 = vld [vmem:[#allocation5 + $0x134] sm:$0xf0]  ;;  %v1694_v14 = vld [vmem:[#allocation5 + $0x1e0] sm:$0xf] }
  0x18   :  { %v1723_v12 = vor.u32 %v2010_v9, %v1720_v10  ;;  %v2007_v15 = vld [vmem:[#allocation5 + $0x1f4] sm:$0xf0]  ;;  %557 = vmatpush.bf16.msra.mxu1 %v1719_v7  ;;  %v1599_v16 = vor.u32 %v1983_v13, %v1598_v11  ;;  %v1980_v18 = vld [vmem:[#allocation5 + $0x124] sm:$0xf]  ;;  %v1600_v19 = vld [vmem:[#allocation5 + $0x138] sm:$0xf0] }
  0x19   :  { %566 = vmatpush.bf16.msra.mxu2 %v1627_v8  ;;  %v1695_v17 = vor.u32 %v2007_v15, %v1694_v14  ;;  %v2004_v20 = vld [vmem:[#allocation5 + $0x1e4] sm:$0xf]  ;;  %v1603_v21 = vor.u32 %v1980_v18, %v1600_v19  ;;  %v1696_v22 = vld [vmem:[#allocation5 + $0x1f8] sm:$0xf0]  ;;  %v1574_v23 = vld [vmem:[#allocation5 + $0xf0] sm:$0xf] }
  0x1a   :  { %583 = vmatpush.bf16.msra.mxu3 %v1723_v12  ;;  %v1977_v24 = vld [vmem:[#allocation5 + $0x104] sm:$0xf0]  ;;  %v1699_v25 = vor.u32 %v2004_v20, %v1696_v22  ;;  %v1670_v26 = vld [vmem:[#allocation5 + $0x1b0] sm:$0xf]  ;;  %v1974_v28 = vld [vmem:[#allocation5 + $0xf4] sm:$0xf] }
  0x1b   :  { %v2001_v27 = vld [vmem:[#allocation5 + $0x1c4] sm:$0xf0]  ;;  %541 = vmatpush.bf16.msra.mxu0 %v1599_v16  ;;  %v1575_v29 = vor.u32 %v1977_v24, %v1574_v23  ;;  %v1576_v30 = vld [vmem:[#allocation5 + $0x108] sm:$0xf0]  ;;  %v1998_v31 = vld [vmem:[#allocation5 + $0x1b4] sm:$0xf] }
  0x1c   :  { %v1672_v32 = vld [vmem:[#allocation5 + $0x1c8] sm:$0xf0]  ;;  %558 = vmatpush.bf16.msra.mxu1 %v1695_v17  ;;  %v1671_v33 = vor.u32 %v2001_v27, %v1670_v26  ;;  %v1579_v34 = vor.u32 %v1974_v28, %v1576_v30  ;;  %v1550_v35 = vld [vmem:[#allocation5 + $0xc0] sm:$0xf]  ;;  %v1971_v36 = vld [vmem:[#allocation5 + $0xd4] sm:$0xf0] }
  0x1d   :  { %567 = vmatpush.bf16.msra.mxu2 %v1603_v21  ;;  %v1646_v37 = vld [vmem:[#allocation5 + $0x180] sm:$0xf]  ;;  %v1675_v38 = vor.u32 %v1998_v31, %v1672_v32  ;;  %v1995_v39 = vld [vmem:[#allocation5 + $0x194] sm:$0xf0]  ;;  %v1968_v40 = vld [vmem:[#allocation5 + $0xc4] sm:$0xf]  ;;  %v1551_v45 = vor.u32 %v1971_v36, %v1550_v35 }
  0x1e   :  { %584 = vmatpush.bf16.msra.mxu3 %v1699_v25  ;;  %v1552_v41 = vld [vmem:[#allocation5 + $0xd8] sm:$0xf0]  ;;  %v1992_v42 = vld [vmem:[#allocation5 + $0x184] sm:$0xf]  ;;  %v1630_v44 = vld [vmem:[#allocation5 + $0x158] sm:$0xf]  ;;  %v1647_v49 = vor.u32 %v1995_v39, %v1646_v37 }
  0x1f   :  { %v1648_v43 = vld [vmem:[#allocation5 + $0x198] sm:$0xf0]  ;;  %542 = vmatpush.bf16.msra.mxu0 %v1575_v29  ;;  %v1990_v46 = vld [vmem:[#allocation5 + $0x16c] sm:$0xf0]  ;;  %v1726_v47 = vld [vmem:[#allocation5 + $0x218] sm:$0xf]  ;;  %v1555_v50 = vor.u32 %v1968_v40, %v1552_v41 }
  0x20   :  { %v2014_v48 = vld [vmem:[#allocation5 + $0x22c] sm:$0xf0]  ;;  %559 = vmatpush.bf16.msra.mxu1 %v1671_v33  ;;  %v1965_v52 = vld [vmem:[#allocation5 + $0xa4] sm:$0xf0]  ;;  %v1651_v53 = vor.u32 %v1992_v42, %v1648_v43  ;;  %v1631_v54 = vor.u32 %v1990_v46, %v1630_v44  ;;  %v1962_v55 = vld [vmem:[#allocation5 + $0x94] sm:$0xf] }
  0x21   :  { %568 = vmatpush.bf16.msra.mxu2 %v1579_v34  ;;  %v1526_v51 = vld [vmem:[#allocation5 + $0x90] sm:$0xf]  ;;  %v1528_v56 = vld [vmem:[#allocation5 + $0xa8] sm:$0xf0]  ;;  %v1727_v57 = vor.u32 %v2014_v48, %v1726_v47  ;;  %v1606_v58 = vld [vmem:[#allocation5 + $0x128] sm:$0xf] }
  0x22   :  { %585 = vmatpush.bf16.msra.mxu3 %v1675_v38  ;;  %v1984_v59 = vld [vmem:[#allocation5 + $0x13c] sm:$0xf0]  ;;  %v1527_v60 = vor.u32 %v1965_v52, %v1526_v51  ;;  %v1702_v61 = vld [vmem:[#allocation5 + $0x1e8] sm:$0xf]  ;;  %v1531_v63 = vor.u32 %v1962_v55, %v1528_v56  ;;  %v1959_v1 = vld [vmem:[#allocation5 + $0x74] sm:$0xf0] }
  0x23   :  { %543 = vmatpush.bf16.msra.mxu0 %v1551_v45  ;;  %v2008_v62 = vld [vmem:[#allocation5 + $0x1fc] sm:$0xf0]  ;;  %v1607_v2 = vor.u32 %v1984_v59, %v1606_v58  ;;  %v1956_v3 = vld [vmem:[#allocation5 + $0x64] sm:$0xf]  ;;  %v1504_v4 = vld [vmem:[#allocation5 + $0x78] sm:$0xf0] }
  0x24   :  { %560 = vmatpush.bf16.msra.mxu1 %v1647_v49  ;;  %v1502_v0 = vld [vmem:[#allocation5 + $0x60] sm:$0xf]  ;;  %v1582_v5 = vld [vmem:[#allocation5 + $0xf8] sm:$0xf]  ;;  %v1703_v6 = vor.u32 %v2008_v62, %v1702_v61  ;;  %v1978_v7 = vld [vmem:[#allocation5 + $0x10c] sm:$0xf0]  ;;  %v1507_v13 = vor.u32 %v1956_v3, %v1504_v4 }
  0x25   :  { %569 = vmatpush.bf16.msra.mxu2 %v1555_v50  ;;  %v1678_v8 = vld [vmem:[#allocation5 + $0x1b8] sm:$0xf]  ;;  %v81_v9 = vld [vmem:[#allocation2] sm:$0xf]  ;;  %v1503_v10 = vor.u32 %v1959_v1, %v1502_v0  ;;  %v2002_v11 = vld [vmem:[#allocation5 + $0x1cc] sm:$0xf0]  ;;  %v1583_v17 = vor.u32 %v1978_v7, %v1582_v5 }
  0x26   :  { %586 = vmatpush.bf16.msra.mxu3 %v1651_v53  ;;  %v1478_v12 = vld [vmem:[#allocation5 + $0x30] sm:$0xf]  ;;  %83 = vst [vmem:[#allocation1] ss:$4 sm:$0xff] %v81_v9  ;;  %v1953_v14 = vld [vmem:[#allocation5 + $0x44] sm:$0xf0]  ;;  %v1679_v21 = vor.u32 %v2002_v11, %v1678_v8 }
  0x27   :  { %544 = vmatpush.bf16.msra.mxu0 %v1527_v60  ;;  %v1950_v15 = vld [vmem:[#allocation5 + $0x34] sm:$0xf]  ;;  %v1480_v16 = vld [vmem:[#allocation5 + $0x48] sm:$0xf0]  ;;  %v1558_v18 = vld [vmem:[#allocation5 + $0xc8] sm:$0xf]  ;;  %v1479_v25 = vor.u32 %v1953_v14, %v1478_v12 }
  0x28   :  { %592 = vmatpush.bf16.msrb.mxu1 %v1631_v54  ;;  %v1972_v19 = vld [vmem:[#allocation5 + $0xdc] sm:$0xf0]  ;;  %v1654_v20 = vld [vmem:[#allocation5 + $0x188] sm:$0xf]  ;;  %v1991_v24 = vld [vmem:[#allocation5 + $0x174] sm:$0xf0]  ;;  %v1483_v29 = vor.u32 %v1950_v15, %v1480_v16 }
  0x29   :  { %570 = vmatpush.bf16.msra.mxu2 %v1531_v63  ;;  %v1996_v22 = vld [vmem:[#allocation5 + $0x19c] sm:$0xf0]  ;;  %v1947_v27 = vld [vmem:[#allocation5 + $0x14] sm:$0xf0]  ;;  %v1944_v28 = vld [vmem:[#allocation5 + $0x4] sm:$0xf]  ;;  %v1559_v33 = vor.u32 %v1972_v19, %v1558_v18 }
  0x2a   :  { %609 = vmatpush.bf16.msrb.mxu3 %v1727_v57  ;;  %v1638_v23 = vld [vmem:[#allocation5 + $0x160] sm:$0xf]  ;;  %v1456_v30 = vld [vmem:[#allocation5 + $0x18] sm:$0xf0]  ;;  %v1534_v31 = vld [vmem:[#allocation5 + $0x98] sm:$0xf]  ;;  %v1655_v38 = vor.u32 %v1996_v22, %v1654_v20 }
  0x2b   :  { %545 = vmatpush.bf16.msra.mxu0 %v1503_v10  ;;  %v1454_v26 = vld [vmem:[#allocation5] sm:$0xf]  ;;  %v1966_v32 = vld [vmem:[#allocation5 + $0xac] sm:$0xf0]  ;;  %v1987_v34 = vld [vmem:[#allocation5 + $0x15c] sm:$0xf]  ;;  %v1639_v41 = vor.u32 %v1991_v24, %v1638_v23  ;;  %v1459_v44 = vor.u32 %v1944_v28, %v1456_v30 }
  0x2c   :  { %593 = vmatpush.bf16.msrb.mxu1 %v1607_v2  ;;  %v1632_v35 = vld [vmem:[#allocation5 + $0x170] sm:$0xf0]  ;;  %v2011_v36 = vld [vmem:[#allocation5 + $0x21c] sm:$0xf]  ;;  %vm536_vm0 = vcmask 523264   ;;  %v1455_v42 = vor.u32 %v1947_v27, %v1454_v26  ;;  %v1535_v48 = vor.u32 %v1966_v32, %v1534_v31  ;;  %s2222_s15 = smov [#allocation10]  }
  0x2d   :  { %571 = vmatpush.bf16.msra.mxu2 %v1507_v13  ;;  %v85_v37 = vld.sshfl [vmem:[#allocation1 + $0x8] sm:$0xff pattern:$0x73625140]  ;;  %v1728_v39 = vld [vmem:[#allocation5 + $0x230] sm:$0xf0]  ;;  %v1635_v45 = vor.u32 %v1987_v34, %v1632_v35  ;;  %s1438_s16 = sshll.u32 %s2222_s15, 4  ;;  %s1439_s16 = int_to_ptr.vmem [resolvable:$true] %s1438_s16 }
  0x2e   :  { %610 = vmatpush.bf16.msrb.mxu3 %v1703_v6  ;;  %v2265_v40 = vpack.c.bf16 %v85_v37, %v85_v37  ;;  %v84_v43 = vld.sshfl [vmem:[#allocation1] sm:$0xff pattern:$0x73625140]  ;;  %v1614_v46 = vld [vmem:[#allocation5 + $0x130] sm:$0xf]  ;;  %v1731_v49 = vor.u32 %v2011_v36, %v1728_v39  ;;  %s1440_s19 = sshll.u32 %s2499_s5, 4  ;;  %s1441_s19 = int_to_ptr.hbm [resolvable:$true] %s1440_s19 }
  0x2f   :  { %546 = vmatpush.bf16.msra.mxu0 %v1479_v25  ;;  %v1985_v47 = vld [vmem:[#allocation5 + $0x144] sm:$0xf0]  ;;  %v1981_v51 = vld [vmem:[#allocation5 + $0x12c] sm:$0xf]  ;;  %v1608_v52 = vld [vmem:[#allocation5 + $0x140] sm:$0xf0]  ;;  %v2271_v53 = vpack.c.bf16 %v84_v43, %v84_v43 }
  0x30   :  { %594 = vmatpush.bf16.msrb.mxu1 %v1583_v17  ;;  %1741 = vmatmul.msk.bf16.vlgmr.msra.gmra.mxu3 %vm536_vm0, %v2265_v40  ;;  %v1510_v50 = vld [vmem:[#allocation5 + $0x68] sm:$0xf]  ;;  %v1960_v54 = vld [vmem:[#allocation5 + $0x7c] sm:$0xf0]  ;;  %v2005_v55 = vld [vmem:[#allocation5 + $0x1ec] sm:$0xf]  ;;  %v1615_v57 = vor.u32 %v1985_v47, %v1614_v46  ;;  %v1611_v58 = vor.u32 %v1981_v51, %v1608_v52 }
  0x31   :  { %572 = vmatpush.bf16.msra.mxu2 %v1483_v29  ;;  %1740 = vmatmul.msk.bf16.vlgmr.msra.gmra.mxu1 %vm536_vm0, %v2265_v40  ;;  %v1704_v56 = vld [vmem:[#allocation5 + $0x200] sm:$0xf0]  ;;  %v1590_v59 = vld [vmem:[#allocation5 + $0x100] sm:$0xf]  ;;  %v1979_v60 = vld [vmem:[#allocation5 + $0x114] sm:$0xf0]  ;;  %v1511_v61 = vor.u32 %v1960_v54, %v1510_v50 }
  0x32   :  { %611 = vmatpush.bf16.msrb.mxu3 %v1679_v21  ;;  %v1707_v62 = vor.u32 %v2005_v55, %v1704_v56  ;;  %v1486_v63 = vld [vmem:[#allocation5 + $0x38] sm:$0xf]  ;;  %v1975_v0 = vld [vmem:[#allocation5 + $0xfc] sm:$0xf]  ;;  %v1584_v1 = vld [vmem:[#allocation5 + $0x110] sm:$0xf0]  ;;  %v1591_v5 = vor.u32 %v1979_v60, %v1590_v59 }
  0x33   :  { %547 = vmatpush.bf16.msra.mxu0 %v1455_v42  ;;  %v1954_v2 = vld [vmem:[#allocation5 + $0x4c] sm:$0xf0]  ;;  %v1999_v3 = vld [vmem:[#allocation5 + $0x1bc] sm:$0xf]  ;;  %v1680_v4 = vld [vmem:[#allocation5 + $0x1d0] sm:$0xf0]  ;;  %v1587_v6 = vor.u32 %v1975_v0, %v1584_v1 }
  0x34   :  { %595 = vmatpush.bf16.msrb.mxu1 %v1559_v33  ;;  %v1566_v7 = vld [vmem:[#allocation5 + $0xd0] sm:$0xf]  ;;  %v1973_v8 = vld [vmem:[#allocation5 + $0xe4] sm:$0xf0]  ;;  %v1487_v9 = vor.u32 %v1954_v2, %v1486_v63  ;;  %v1683_v10 = vor.u32 %v1999_v3, %v1680_v4  ;;  %v1969_v12 = vld [vmem:[#allocation5 + $0xcc] sm:$0xf] }
  0x35   :  { %573 = vmatpush.bf16.msra.mxu2 %v1459_v44  ;;  %v1462_v11 = vld [vmem:[#allocation5 + $0x8] sm:$0xf]  ;;  %v1560_v13 = vld [vmem:[#allocation5 + $0xe0] sm:$0xf0]  ;;  %v1948_v14 = vld [vmem:[#allocation5 + $0x1c] sm:$0xf0]  ;;  %v1567_v17 = vor.u32 %v1973_v8, %v1566_v7 }
  0x36   :  { %612 = vmatpush.bf16.msrb.mxu3 %v1655_v38  ;;  %548 = vmatmul.bf16.vlgmr.msra.gmra.mxu0 %v2271_v53  ;;  %v1993_v15 = vld [vmem:[#allocation5 + $0x18c] sm:$0xf]  ;;  %v1656_v16 = vld [vmem:[#allocation5 + $0x1a0] sm:$0xf0]  ;;  %v1542_v18 = vld [vmem:[#allocation5 + $0xa0] sm:$0xf]  ;;  %v1563_v21 = vor.u32 %v1969_v12, %v1560_v13  ;;  %v1463_v25 = vor.u32 %v1948_v14, %v1462_v11 }
  0x37   :  { %618 = vmatpush.bf16.msrb.mxu0 %v1635_v45  ;;  %v1734_v19 = vld [vmem:[#allocation5 + $0x220] sm:$0xf]  ;;  %v2015_v20 = vld [vmem:[#allocation5 + $0x234] sm:$0xf0]  ;;  %v1988_v23 = vld [vmem:[#allocation5 + $0x164] sm:$0xf]  ;;  %v1659_v28 = vor.u32 %v1993_v15, %v1656_v16 }
  0x38   :  { %596 = vmatpush.bf16.msrb.mxu1 %v1535_v48  ;;  %574 = vmatmul.bf16.vlgmr.msra.gmra.mxu2 %v2271_v53  ;;  %v1967_v22 = vld [vmem:[#allocation5 + $0xb4] sm:$0xf0]  ;;  %v1640_v24 = vld [vmem:[#allocation5 + $0x178] sm:$0xf0]  ;;  %v1536_v27 = vld [vmem:[#allocation5 + $0xb0] sm:$0xf0]  ;;  %v1735_v29 = vor.u32 %v2015_v20, %v1734_v19 }
  0x39   :  { %635 = vmatpush.bf16.msrb.mxu2 %v1731_v49  ;;  %v1963_v26 = vld [vmem:[#allocation5 + $0x9c] sm:$0xf]  ;;  %v1543_v30 = vor.u32 %v1967_v22, %v1542_v18  ;;  %v1643_v31 = vor.u32 %v1988_v23, %v1640_v24  ;;  %v1518_v32 = vld [vmem:[#allocation5 + $0x70] sm:$0xf]  ;;  %v2009_v34 = vld [vmem:[#allocation5 + $0x204] sm:$0xf0] }
  0x3a   :  { %644 = vmatpush.bf16.msra.mxu3 %v1639_v41  ;;  %v1710_v33 = vld [vmem:[#allocation5 + $0x1f0] sm:$0xf]  ;;  %v1539_v35 = vor.u32 %v1963_v26, %v1536_v27  ;;  %v1961_v36 = vld [vmem:[#allocation5 + $0x84] sm:$0xf0]  ;;  %v1982_v37 = vld [vmem:[#allocation5 + $0x134] sm:$0xf] }
  0x3b   :  { %619 = vmatpush.bf16.msrb.mxu0 %v1611_v58  ;;  %v1616_v38 = vld [vmem:[#allocation5 + $0x148] sm:$0xf0]  ;;  %v1512_v41 = vld [vmem:[#allocation5 + $0x80] sm:$0xf0]  ;;  %v1711_v42 = vor.u32 %v2009_v34, %v1710_v33  ;;  %v1519_v43 = vor.u32 %v1961_v36, %v1518_v32  ;;  %v1494_v45 = vld [vmem:[#allocation5 + $0x40] sm:$0xf] }
  0x3c   :  { %597 = vmatpush.bf16.msrb.mxu1 %v1511_v61  ;;  %v1957_v39 = vld [vmem:[#allocation5 + $0x6c] sm:$0xf]  ;;  %v1619_v44 = vor.u32 %v1982_v37, %v1616_v38  ;;  %v1686_v46 = vld [vmem:[#allocation5 + $0x1c0] sm:$0xf]  ;;  %v2003_v47 = vld [vmem:[#allocation5 + $0x1d4] sm:$0xf0] }
  0x3d   :  { %636 = vmatpush.bf16.msrb.mxu2 %v1707_v62  ;;  %v1515_v48 = vor.u32 %v1957_v39, %v1512_v41  ;;  %v1955_v49 = vld [vmem:[#allocation5 + $0x54] sm:$0xf0]  ;;  %v1976_v50 = vld [vmem:[#allocation5 + $0x104] sm:$0xf]  ;;  %v1592_v51 = vld [vmem:[#allocation5 + $0x118] sm:$0xf0]  ;;  %v1687_v55 = vor.u32 %v2003_v47, %v1686_v46 }
  0x3e   :  { %645 = vmatpush.bf16.msra.mxu3 %v1615_v57  ;;  %v1951_v52 = vld [vmem:[#allocation5 + $0x3c] sm:$0xf]  ;;  %v1488_v54 = vld [vmem:[#allocation5 + $0x50] sm:$0xf0]  ;;  %v1495_v56 = vor.u32 %v1955_v49, %v1494_v45  ;;  %v1595_v57 = vor.u32 %v1976_v50, %v1592_v51  ;;  %v1470_v58 = vld [vmem:[#allocation5 + $0x10] sm:$0xf] }
  0x3f   :  { %620 = vmatpush.bf16.msrb.mxu0 %v1587_v6  ;;  %v1662_v59 = vld [vmem:[#allocation5 + $0x190] sm:$0xf]  ;;  %v1997_v60 = vld [vmem:[#allocation5 + $0x1a4] sm:$0xf0]  ;;  %v1491_v61 = vor.u32 %v1951_v52, %v1488_v54  ;;  %v1970_v63 = vld [vmem:[#allocation5 + $0xd4] sm:$0xf] }
  0x40   :  { %598 = vmatpush.bf16.msrb.mxu1 %v1487_v9  ;;  %1742 = vmatmul.msk.bf16.vlgmr.msrb.gmra.mxu3 %vm536_vm0, %v2265_v40  ;;  %v1949_v62 = vld [vmem:[#allocation5 + $0x24] sm:$0xf0]  ;;  %v1568_v0 = vld [vmem:[#allocation5 + $0xe8] sm:$0xf0]  ;;  %v1464_v2 = vld [vmem:[#allocation5 + $0x20] sm:$0xf0] }
  0x41   :  { %637 = vmatpush.bf16.msrb.mxu2 %v1683_v10  ;;  %v1945_v1 = vld [vmem:[#allocation5 + $0xc] sm:$0xf]  ;;  %v2012_v3 = vld [vmem:[#allocation5 + $0x224] sm:$0xf]  ;;  %v1736_v4 = vld [vmem:[#allocation5 + $0x238] sm:$0xf0]  ;;  %v1471_v6 = vor.u32 %v1949_v62, %v1470_v58  ;;  %v1571_v7 = vor.u32 %v1970_v63, %v1568_v0 }
  0x42   :  { %646 = vmatpush.bf16.msra.mxu3 %v1591_v5  ;;  %v1663_v5 = vor.u32 %v1997_v60, %v1662_v59  ;;  %v1467_v8 = vor.u32 %v1945_v1, %v1464_v2  ;;  %v1964_v9 = vld [vmem:[#allocation5 + $0xa4] sm:$0xf]  ;;  %v1544_v10 = vld [vmem:[#allocation5 + $0xb8] sm:$0xf0]  ;;  %v1739_v11 = vor.u32 %v2012_v3, %v1736_v4  ;;  %v2006_v12 = vld [vmem:[#allocation5 + $0x1f4] sm:$0xf] }
  0x43   :  { %621 = vmatpush.bf16.msrb.mxu0 %v1563_v21  ;;  %v1712_v13 = vld [vmem:[#allocation5 + $0x208] sm:$0xf0]  ;;  %v1547_v14 = vor.u32 %v1964_v9, %v1544_v10  ;;  %v1958_v15 = vld [vmem:[#allocation5 + $0x74] sm:$0xf]  ;;  %v2000_v18 = vld [vmem:[#allocation5 + $0x1c4] sm:$0xf] }
  0x44   :  { %599 = vmatpush.bf16.msrb.mxu1 %v1463_v25  ;;  %v1520_v16 = vld [vmem:[#allocation5 + $0x88] sm:$0xf0]  ;;  %v1688_v19 = vld [vmem:[#allocation5 + $0x1d8] sm:$0xf0]  ;;  %v1952_v21 = vld [vmem:[#allocation5 + $0x44] sm:$0xf] }
  0x45   :  { %638 = vmatpush.bf16.msrb.mxu2 %v1659_v28  ;;  %v1523_v20 = vor.u32 %v1958_v15, %v1520_v16  ;;  %v1496_v22 = vld [vmem:[#allocation5 + $0x58] sm:$0xf0]  ;;  %v1691_v23 = vor.u32 %v2000_v18, %v1688_v19  ;;  %v1994_v24 = vld [vmem:[#allocation5 + $0x194] sm:$0xf]  ;;  %v1664_v25 = vld [vmem:[#allocation5 + $0x1a8] sm:$0xf0] }
  0x46   :  { %647 = vmatpush.bf16.msra.mxu3 %v1567_v17  ;;  %v1715_v17 = vor.u32 %v2006_v12, %v1712_v13  ;;  %v1499_v26 = vor.u32 %v1952_v21, %v1496_v22  ;;  %v1946_v27 = vld [vmem:[#allocation5 + $0x14] sm:$0xf]  ;;  %v1472_v28 = vld [vmem:[#allocation5 + $0x28] sm:$0xf0]  ;;  %v2023_v34 = vld [vmem:[#allocation8 + $0x38] sm:$0xff] }
  0x47   :  { %600 = vmatmul.bf16.vlgmr.msrb.gmra.mxu1 %v2271_v53  ;;  %622 = vmatpush.bf16.msrb.mxu0 %v1539_v35  ;;  %v2022_v39 = vld [vmem:[#allocation8 + $0x30] sm:$0xff]  ;;  %v2021_v49 = vld [vmem:[#allocation8 + $0x28] sm:$0xff]  ;;  %v2020_v59 = vld [vmem:[#allocation8 + $0x20] sm:$0xff] }
  0x48   :  { %661 = vmatpush.bf16.msra.mxu1 %v1735_v29  ;;  %1743 = vmatmul.msk.bf16.vlgmr.msrb.gmra.mxu2 %vm536_vm0, %v2265_v40  ;;  %v1667_v29 = vor.u32 %v1994_v24, %v1664_v25  ;;  %v2039_v62 = vld [vmem:[#allocation8 + $0xb8] sm:$0xff]  ;;  %v2029_v3 = vld [vmem:[#allocation8 + $0x68] sm:$0xff]  ;;  %v2038_v12 = vld [vmem:[#allocation8 + $0xb0] sm:$0xff] }
  0x49   :  { %670 = vmatpush.bf16.msra.mxu2 %v1643_v31  ;;  %v2287_v31 = vld [vmem:[#allocation7] sm:$0x3f]  ;;  %v2028_v15 = vld [vmem:[#allocation8 + $0x60] sm:$0xff]  ;;  %v2018_v24 = vld [vmem:[#allocation8 + $0x10] sm:$0xff] }
  0x4a   :  { %648 = vmatpush.bf16.msra.mxu3 %v1543_v30  ;;  %v1475_v30 = vor.u32 %v1946_v27, %v1472_v28  ;;  %v164_v33 = vperm.slane %v2287_v31, 0  ;;  %v166_v54 = vperm.slane %v2287_v31, 2 }
  0x4b   :  { %623 = vmatpush.bf16.msrb.mxu0 %v1515_v48 }
  0x4c   :  { %662 = vmatpush.bf16.msra.mxu1 %v1711_v42  ;;  %v165_v42 = vperm.slane %v2287_v31, 1 }
  0x4d   :  { %671 = vmatpush.bf16.msra.mxu2 %v1619_v44 }
  0x4e   :  { %649 = vmatpush.bf16.msra.mxu3 %v1519_v43 }
  0x4f   :  { %624 = vmatpush.bf16.msrb.mxu0 %v1491_v61 }
  0x50   :  { %663 = vmatpush.bf16.msra.mxu1 %v1687_v55  ;;  %v2030_v55 = vld [vmem:[#allocation8 + $0x70] sm:$0xff] }
  0x51   :  { %672 = vmatpush.bf16.msra.mxu2 %v1595_v57 }
  0x52   :  { %650 = vmatpush.bf16.msra.mxu3 %v1495_v56 }
  0x53   :  { %625 = vmatpush.bf16.msrb.mxu0 %v1467_v8  ;;  %v2019_v8 = vld [vmem:[#allocation8 + $0x18] sm:$0xff] }
  0x54   :  { %664 = vmatpush.bf16.msra.mxu1 %v1663_v5 }
  0x55   :  { %673 = vmatpush.bf16.msra.mxu2 %v1571_v7 }
  0x56   :  { %651 = vmatpush.bf16.msra.mxu3 %v1471_v6  ;;  %626 = vmatmul.bf16.vlgmr.msrb.gmra.mxu0 %v2271_v53 }
  0x57   :  { %687 = vmatpush.bf16.msra.mxu0 %v1739_v11  ;;  %1744 = vmatmul.msk.bf16.vlgmr.msra.gmra.mxu1 %vm536_vm0, %v2265_v40 }
  0x58   :  { %1354 = vmatpush.bf16.msrb.mxu1 %v2023_v34  ;;  %v2037_v34 = vld [vmem:[#allocation8 + $0xa8] sm:$0xff] }
  0x59   :  { %652 = vmatmul.bf16.vlgmr.msra.gmra.mxu3 %v2271_v53  ;;  %674 = vmatpush.bf16.msra.mxu2 %v1547_v14 }
  0x5b   :  { %688 = vmatpush.bf16.msra.mxu0 %v1715_v17 }
  0x5c   :  { %1355 = vmatpush.bf16.msrb.mxu1 %v2022_v39  ;;  %v167_v39 = vperm.slane %v2287_v31, 3 }
  0x5d   :  { %675 = vmatpush.bf16.msra.mxu2 %v1523_v20 }
  0x5f   :  { %689 = vmatpush.bf16.msra.mxu0 %v1691_v23 }
  0x60   :  { %1356 = vmatpush.bf16.msrb.mxu1 %v2021_v49 }
  0x61   :  { %676 = vmatpush.bf16.msra.mxu2 %v1499_v26 }
  0x63   :  { %690 = vmatpush.bf16.msra.mxu0 %v1667_v29 }
  0x64   :  { %1357 = vmatpush.bf16.msrb.mxu1 %v2020_v59 }
  0x65   :  { %677 = vmatpush.bf16.msra.mxu2 %v1475_v30 }
  0x66   :  { %1745 = vmatmul.msk.bf16.vlgmr.msra.gmra.mxu0 %vm536_vm0, %v2265_v40  ;;  %v2031_v40 = vld [vmem:[#allocation8 + $0x78] sm:$0xff] }
  0x67   :  { %1367 = vmatpush.bf16.msrb.mxu3 %v2031_v40  ;;  %1380 = vmatpush.bf16.msrb.mxu0 %v2039_v62  ;;  %v168_v62 = vperm.slane %v2287_v31, 4 }
  0x68   :  { %678 = vmatmul.bf16.vlgmr.msra.gmra.mxu2 %v2271_v53  ;;  %1358 = vmatpush.bf16.msrb.mxu1 %v2019_v8 }
  0x6b   :  { %1368 = vmatpush.bf16.msrb.mxu3 %v2030_v55  ;;  %1381 = vmatpush.bf16.msrb.mxu0 %v2038_v12 }
  0x6c   :  { %1359 = vmatpush.bf16.msrb.mxu1 %v2018_v24 }
  0x6f   :  { %1369 = vmatpush.bf16.msrb.mxu3 %v2029_v3  ;;  %1382 = vmatpush.bf16.msrb.mxu0 %v2037_v34 }
  0x73   :  { %1370 = vmatpush.bf16.msrb.mxu3 %v2028_v15 }
  0xae   :  { %v562_v32 = vpop.f32.mrf.mxu1 }
  0xb3   :  { %v549_v35 = vpop.f32.mrf.mxu0  ;;  %v588_v36 = vpop.f32.mrf.mxu3 }
  0xb4   :  { %v550_v37 = vadd.f32 %v549_v35, %v164_v33 }
  0xb6   :  { %v2290_v38 = vadd.f32 %v562_v32, %v550_v37  ;;  %v564_v41 = vpop.f32.mrf.mxu1 }
  0xb7   :  { %v2027_v41 = vld [vmem:[#allocation8 + $0x58] sm:$0xff] }
  0xb8   :  { %v2294_v53 = vmul.f32 0.70710677, %v2290_v38  ;;  %1371 = vmatpush.bf16.msrb.mxu3 %v2027_v41 }
  0xba   :  { %v708_v43 = vmul.f32 %v2294_v53, %v2294_v53 }
  0xbb   :  { %v575_v44 = vpop.f32.mrf.mxu2  ;;  %v551_v46 = vpop.f32.mrf.mxu0 }
  0xbc   :  { %v576_v45 = vadd.f32 %v575_v44, %v165_v42  ;;  %v2298_v47 = vmin.f32 %v708_v43, 16.0  ;;  %v590_v48 = vpop.f32.mrf.mxu3  ;;  %v2017_v46 = vld [vmem:[#allocation8 + $0x8] sm:$0xff] }
  0xbd   :  { %1360 = vmatpush.bf16.msrb.mxu1 %v2017_v46 }
  0xbe   :  { %v2300_v50 = vadd.f32 %v588_v36, %v576_v45  ;;  %v710_v51 = vmul.f32 2.1237322e-06, %v2298_v47  ;;  %v721_v52 = vmul.f32 3.8918573e-05, %v2298_v47 }
  0xc0   :  { %v2306_v56 = vmul.f32 0.70710677, %v2300_v50  ;;  %v711_v57 = vadd.f32 0.00028619796, %v710_v51  ;;  %v722_v58 = vadd.f32 0.001143296, %v721_v52 }
  0xc1   :  { %v2036_v52 = vld [vmem:[#allocation8 + $0xa0] sm:$0xff] }
  0xc2   :  { %v748_v60 = vmul.f32 %v2306_v56, %v2306_v56  ;;  %v712_v63 = vmul.f32 %v711_v57, %v2298_v47  ;;  %v723_v0 = vmul.f32 %v722_v58, %v2298_v47  ;;  %1383 = vmatpush.bf16.msrb.mxu0 %v2036_v52 }
  0xc3   :  { %v577_v2 = vpop.f32.mrf.mxu2 }
  0xc4   :  { %v601_v61 = vpop.f32.mrf.mxu1  ;;  %v2312_v4 = vmin.f32 %v748_v60, 16.0  ;;  %v713_v5 = vadd.f32 0.0036580483, %v712_v63  ;;  %v724_v6 = vadd.f32 0.014752088, %v723_v0  ;;  %v614_v7 = vpop.f32.mrf.mxu3  ;;  %v2026_v60 = vld [vmem:[#allocation8 + $0x50] sm:$0xff] }
  0xc5   :  { %v602_v1 = vadd.f32 %v601_v61, %v166_v54  ;;  %1372 = vmatpush.bf16.msrb.mxu3 %v2026_v60  ;;  %v2016_v2 = vld [vmem:[#allocation8] sm:$0xff] }
  0xc6   :  { %v750_v9 = vmul.f32 2.1237322e-06, %v2312_v4  ;;  %v761_v10 = vmul.f32 3.8918573e-05, %v2312_v4  ;;  %v714_v13 = vmul.f32 %v713_v5, %v2298_v47  ;;  %v725_v14 = vmul.f32 %v724_v6, %v2298_v47  ;;  %v2035_v6 = vld [vmem:[#allocation8 + $0x98] sm:$0xff]  ;;  %1361 = vmatpush.bf16.msrb.mxu1 %v2016_v2 }
  0xc7   :  { %v2316_v11 = vadd.f32 %v614_v7, %v602_v1  ;;  %v2047_v7 = vld [vmem:[#allocation8 + $0xf8] sm:$0xff]  ;;  %1384 = vmatpush.bf16.msrb.mxu0 %v2035_v6 }
  0xc8   :  { %v751_v16 = vadd.f32 0.00028619796, %v750_v9  ;;  %v762_v17 = vadd.f32 0.001143296, %v761_v10  ;;  %v726_v18 = vadd.f32 0.112945676, %v725_v14  ;;  %1393 = vmatpush.bf16.msrb.mxu2 %v2047_v7 }
  0xc9   :  { %v2321_v19 = vmul.f32 0.70710677, %v2316_v11  ;;  %v715_v20 = vadd.f32 0.05243302, %v714_v13  ;;  %v2025_v13 = vld [vmem:[#allocation8 + $0x48] sm:$0xff] }
  0xca   :  { %v752_v21 = vmul.f32 %v751_v16, %v2312_v4  ;;  %v763_v22 = vmul.f32 %v762_v17, %v2312_v4  ;;  %v727_v25 = vmul.f32 %v726_v18, %v2298_v47  ;;  %1373 = vmatpush.bf16.msrb.mxu3 %v2025_v13 }
  0xcb   :  { %v788_v26 = vmul.f32 %v2321_v19, %v2321_v19  ;;  %v640_v29 = vpop.f32.mrf.mxu2  ;;  %v716_v35 = vmul.f32 %v715_v20, %v2298_v47 }
  0xcc   :  { %v603_v23 = vpop.f32.mrf.mxu1  ;;  %v753_v27 = vadd.f32 0.0036580483, %v752_v21  ;;  %v764_v28 = vadd.f32 0.014752088, %v763_v22  ;;  %v728_v30 = vadd.f32 0.4994258, %v727_v25  ;;  %v616_v33 = vpop.f32.mrf.mxu3 }
  0xcd   :  { %v2328_v32 = vmin.f32 %v788_v26, 16.0  ;;  %v717_v54 = vadd.f32 0.18741608, %v716_v35  ;;  %v2024_v33 = vld [vmem:[#allocation8 + $0x40] sm:$0xff] }
  0xce   :  { %v754_v36 = vmul.f32 %v753_v27, %v2312_v4  ;;  %v765_v37 = vmul.f32 %v764_v28, %v2312_v4  ;;  %v729_v42 = vmul.f32 %v728_v30, %v2298_v47  ;;  %v2034_v27 = vld [vmem:[#allocation8 + $0x90] sm:$0xff]  ;;  %1374 = vmatpush.bf16.msrb.mxu3 %v2024_v33 }
  0xcf   :  { %v790_v40 = vmul.f32 2.1237322e-06, %v2328_v32  ;;  %v801_v43 = vmul.f32 3.8918573e-05, %v2328_v32  ;;  %v718_v8 = vmul.f32 %v717_v54, %v2298_v47  ;;  %v2055_v47 = vld [vmem:[#allocation8 + $0x138] sm:$0xff]  ;;  %v2046_v28 = vld [vmem:[#allocation8 + $0xf0] sm:$0xff]  ;;  %1385 = vmatpush.bf16.msrb.mxu0 %v2034_v27 }
  0xd0   :  { %v755_v44 = vadd.f32 0.05243302, %v754_v36  ;;  %v766_v45 = vadd.f32 0.112945676, %v765_v37  ;;  %v2337_v48 = vadd.f32 1.0, %v729_v42  ;;  %1406 = vmatpush.bf16.msra.mxu1 %v2055_v47  ;;  %1394 = vmatpush.bf16.msrb.mxu2 %v2046_v28 }
  0xd1   :  { %v791_v49 = vadd.f32 0.00028619796, %v790_v40  ;;  %v802_v57 = vadd.f32 0.001143296, %v801_v43  ;;  %v719_v34 = vadd.f32 1.1283791, %v718_v8 }
  0xd2   :  { %v767_v55 = vmul.f32 %v766_v45, %v2312_v4  ;;  %2074 = vrcp.f32 %v2337_v48  ;;  %v756_v61 = vmul.f32 %v755_v44, %v2312_v4  ;;  %v740_v22 = vand.u32 2147483647, %v2337_v48  ;;  %v2054_v43 = vld [vmem:[#allocation8 + $0x130] sm:$0xff]  ;;  %v2033_v45 = vld [vmem:[#allocation8 + $0x88] sm:$0xff] }
  0xd3   :  { %v627_v51 = vpop.f32.mrf.mxu0  ;;  %v792_v0 = vmul.f32 %v791_v49, %v2328_v32  ;;  %v642_v1 = vpop.f32.mrf.mxu2  ;;  %v803_v3 = vmul.f32 %v802_v57, %v2328_v32  ;;  %v742_v35 = vand.u32 2147483648, %v2337_v48  ;;  %vm736_vm1 = vweird.f32 %v2337_v48  ;;  %1386 = vmatpush.bf16.msrb.mxu0 %v2033_v45 }
  0xd4   :  { %v628_v58 = vadd.f32 %v627_v51, %v167_v39  ;;  %v666_v59 = vpop.f32.mrf.mxu1  ;;  %v768_v63 = vadd.f32 0.4994258, %v767_v55  ;;  %v757_v14 = vadd.f32 0.18741608, %v756_v61  ;;  %v2369_v39 = vmul.f32 0.5, %v2290_v38  ;;  %v2045_v38 = vld [vmem:[#allocation8 + $0xe8] sm:$0xff]  ;;  %1407 = vmatpush.bf16.msra.mxu1 %v2054_v43 }
  0xd5   :  { %v793_v10 = vadd.f32 0.0036580483, %v792_v0  ;;  %v804_v15 = vadd.f32 0.014752088, %v803_v3  ;;  %vm2375_vm3 = vcmp.eq.f32.partialorder %v740_v22, 8.507059e+37  ;;  %v743_v55 = vor.u32 1.1754944e-38, %v742_v35  ;;  %1395 = vmatpush.bf16.msrb.mxu2 %v2045_v38 }
  0xd6   :  { %v2345_v5 = vadd.f32 %v640_v29, %v628_v58  ;;  %v769_v9 = vmul.f32 %v768_v63, %v2312_v4  ;;  %v758_v36 = vmul.f32 %v757_v14, %v2312_v4  ;;  %v720_v2 = vmul.f32 %v719_v34, %v2294_v53 }
  0xd7   :  { %v794_v20 = vmul.f32 %v793_v10, %v2328_v32  ;;  %v805_v23 = vmul.f32 %v804_v15, %v2328_v32  ;;  %v2032_v10 = vld [vmem:[#allocation8 + $0x80] sm:$0xff]  ;;  %v169_v35 = vperm.slane %v2287_v31, 5 }
  0xd8   :  { %v2350_v16 = vmul.f32 0.70710677, %v2345_v5  ;;  %v2352_v18 = vadd.f32 1.0, %v769_v9  ;;  %v2355_v21 = vpop.eup %2074  ;;  %v759_v57 = vadd.f32 1.1283791, %v758_v36  ;;  %v2053_v9 = vld [vmem:[#allocation8 + $0x128] sm:$0xff]  ;;  %1387 = vmatpush.bf16.msrb.mxu0 %v2032_v10 }
  0xd9   :  { %v732_v29 = vmul.f32 %v2355_v21, %v2337_v48  ;;  %v795_v37 = vadd.f32 0.05243302, %v794_v20  ;;  %v806_v42 = vadd.f32 0.112945676, %v805_v23  ;;  %vm737_vm2 = vweird.f32 %v2355_v21  ;;  %v2044_v48 = vld [vmem:[#allocation8 + $0xe0] sm:$0xff]  ;;  %1408 = vmatpush.bf16.msra.mxu1 %v2053_v9  ;;  %v2041_v10 = vld [vmem:[#allocation8 + $0xc8] sm:$0xff] }
  0xda   :  { %v828_v24 = vmul.f32 %v2350_v16, %v2350_v16  ;;  %2076 = vrcp.f32 %v2352_v18  ;;  %vm2394_vm4 = vmor %vm736_vm1, %vm737_vm2  ;;  %v780_v6 = vand.u32 2147483647, %v2352_v18  ;;  %v782_v20 = vand.u32 2147483648, %v2352_v18  ;;  %1396 = vmatpush.bf16.msrb.mxu2 %v2044_v48 }
  0xdb   :  { %v629_v26 = vpop.f32.mrf.mxu0  ;;  %v733_v41 = vsub.f32 1.0, %v732_v29  ;;  %v807_v49 = vmul.f32 %v806_v42, %v2328_v32  ;;  %v796_v58 = vmul.f32 %v795_v37, %v2328_v32  ;;  %v760_v37 = vmul.f32 %v759_v57, %v2306_v56 }
  0xdc   :  { %v653_v12 = vpop.f32.mrf.mxu3  ;;  %v668_v30 = vpop.f32.mrf.mxu1  ;;  %v2371_v40 = vmin.f32 %v828_v24, 16.0  ;;  %v2052_v26 = vld [vmem:[#allocation8 + $0x120] sm:$0xff]  ;;  %vm776_vm6 = vweird.f32 %v2352_v18  ;;  %v783_v44 = vor.u32 1.1754944e-38, %v782_v20  ;;  %vm781_vm8 = vcmp.eq.f32.partialorder %v780_v6, 8.507059e+37 }
  0xdd   :  { %v654_v17 = vadd.f32 %v653_v12, %v168_v62  ;;  %v734_v46 = vmul.f32 %v2355_v21, %v733_v41  ;;  %v808_v63 = vadd.f32 0.4994258, %v807_v49  ;;  %v797_v23 = vadd.f32 0.18741608, %v796_v58  ;;  %v2043_v30 = vld [vmem:[#allocation8 + $0xd8] sm:$0xff]  ;;  %1409 = vmatpush.bf16.msra.mxu1 %v2052_v26 }
  0xde   :  { %v830_v51 = vmul.f32 2.1237322e-06, %v2371_v40  ;;  %v841_v52 = vmul.f32 3.8918573e-05, %v2371_v40  ;;  %1397 = vmatpush.bf16.msrb.mxu2 %v2043_v30  ;;  %v2063_v49 = vld [vmem:[#allocation8 + $0x178] sm:$0xff] }
  0xdf   :  { %v2361_v25 = vadd.f32 %v666_v59, %v654_v17  ;;  %v735_v61 = vadd.f32 %v2355_v21, %v734_v46  ;;  %v809_v13 = vmul.f32 %v808_v63, %v2328_v32  ;;  %v2051_v46 = vld [vmem:[#allocation8 + $0x118] sm:$0xff]  ;;  %v798_v56 = vmul.f32 %v797_v23, %v2328_v32  ;;  %1419 = vmatpush.bf16.msra.mxu3 %v2063_v49 }
  0xe0   :  { %v2077_v60 = vpop.eup %2076  ;;  %v831_v0 = vadd.f32 0.00028619796, %v830_v51  ;;  %v842_v1 = vadd.f32 0.001143296, %v841_v52 }
  0xe1   :  { %v2380_v4 = vmul.f32 0.70710677, %v2361_v25  ;;  %v772_v3 = vmul.f32 %v2077_v60, %v2352_v18  ;;  %v739_v12 = vsel %vm2394_vm4, %v2355_v21, %v735_v61  ;;  %v2415_v24 = vadd.f32 1.0, %v809_v13  ;;  %v2042_v18 = vld [vmem:[#allocation8 + $0xd0] sm:$0xff]  ;;  %1410 = vmatpush.bf16.msra.mxu1 %v2051_v46 }
  0xe2   :  { %v832_v14 = vmul.f32 %v831_v0, %v2371_v40  ;;  %v843_v53 = vmul.f32 %v842_v1, %v2371_v40  ;;  %v744_v15 = vsel %vm2375_vm3, %v743_v55, %v739_v12  ;;  %vm777_vm5 = vweird.f32 %v2077_v60  ;;  %1398 = vmatpush.bf16.msrb.mxu2 %v2042_v18  ;;  %v2050_v1 = vld [vmem:[#allocation8 + $0x110] sm:$0xff]  ;;  %v2059_v18 = vld [vmem:[#allocation8 + $0x158] sm:$0xff] }
  0xe3   :  { %v868_v59 = vmul.f32 %v2380_v4, %v2380_v4  ;;  %v2403_v8 = vpop.f32.mrf.mxu0  ;;  %v773_v17 = vsub.f32 1.0, %v772_v3  ;;  %v745_v22 = vmul.f32 %v744_v15, %v720_v2  ;;  %2078 = vrcp.f32 %v2415_v24  ;;  %vm778_vm7 = vmor %vm776_vm6, %vm777_vm5  ;;  %v2062_v2 = vld [vmem:[#allocation8 + $0x170] sm:$0xff] }
  0xe4   :  { %v655_v54 = vpop.f32.mrf.mxu3  ;;  %v844_v21 = vadd.f32 0.014752088, %v843_v53  ;;  %v833_v34 = vadd.f32 0.0036580483, %v832_v14  ;;  %v799_v6 = vadd.f32 1.1283791, %v798_v56  ;;  %1420 = vmatpush.bf16.msra.mxu3 %v2062_v2  ;;  %vm816_vm9 = vweird.f32 %v2415_v24 }
  0xe5   :  { %v2401_v7 = vmin.f32 %v868_v59, 16.0  ;;  %v774_v27 = vmul.f32 %v2077_v60, %v773_v17  ;;  %v1746_v33 = vclamps-f32 %v745_v22, 1.0  ;;  %1411 = vmatpush.bf16.msra.mxu1 %v2050_v1  ;;  %v822_v20 = vand.u32 2147483648, %v2415_v24  ;;  %v2058_v1 = vld [vmem:[#allocation8 + $0x150] sm:$0xff] }
  0xe6   :  { %v845_v42 = vmul.f32 %v844_v21, %v2371_v40  ;;  %v834_v57 = vmul.f32 %v833_v34, %v2371_v40  ;;  %1399 = vmatpush.bf16.msrb.mxu2 %v2041_v10  ;;  %v2061_v21 = vld [vmem:[#allocation8 + $0x168] sm:$0xff] }
  0xe7   :  { %v870_v47 = vmul.f32 2.1237322e-06, %v2401_v7  ;;  %v881_v29 = vmul.f32 3.8918573e-05, %v2401_v7  ;;  %v775_v41 = vadd.f32 %v2077_v60, %v774_v27  ;;  %v948_v43 = vadd.f32 1.0, %v1746_v33 }
  0xe8   :  { %v846_v51 = vadd.f32 0.112945676, %v845_v42  ;;  %v835_v48 = vadd.f32 0.05243302, %v834_v57  ;;  %1421 = vmatpush.bf16.msra.mxu3 %v2061_v21  ;;  %v823_v42 = vor.u32 1.1754944e-38, %v822_v20 }
  0xe9   :  { %v871_v28 = vadd.f32 0.00028619796, %v870_v47  ;;  %v882_v38 = vadd.f32 0.001143296, %v881_v29  ;;  %v779_v31 = vsel %vm778_vm7, %v2077_v60, %v775_v41  ;;  %v954_v54 = vmul.f32 %v948_v43, %v2369_v39  ;;  %v2079_v60 = vpop.eup %2078  ;;  %v2040_v29 = vld [vmem:[#allocation8 + $0xc0] sm:$0xff] }
  0xea   :  { %v784_v55 = vsel %vm781_vm8, %v783_v44, %v779_v31  ;;  %v847_v61 = vmul.f32 %v846_v51, %v2371_v40  ;;  %v697_v39 = vmul.f32 0.5, %v2300_v50  ;;  %v812_v9 = vmul.f32 %v2079_v60, %v2415_v24  ;;  %1400 = vmatpush.bf16.msrb.mxu2 %v2040_v29  ;;  %v2048_v43 = vld [vmem:[#allocation8 + $0x100] sm:$0xff] }
  0xeb   :  { %v679_v36 = vpop.f32.mrf.mxu2  ;;  %v872_v45 = vmul.f32 %v871_v28, %v2401_v7  ;;  %v694_v52 = vpop.f32.mrf.mxu0  ;;  %v883_v58 = vmul.f32 %v882_v38, %v2401_v7  ;;  %v785_v59 = vmul.f32 %v784_v55, %v760_v37  ;;  %v960_v63 = vpack.c.bf16 %v954_v54, %v954_v54  ;;  %v2060_v44 = vld [vmem:[#allocation8 + $0x160] sm:$0xff] }
  0xec   :  { %v680_v62 = vadd.f32 %v679_v36, %v169_v35  ;;  %v848_v12 = vadd.f32 0.4994258, %v847_v61  ;;  %v813_v17 = vsub.f32 1.0, %v812_v9  ;;  %v820_v50 = vand.u32 2147483647, %v2415_v24  ;;  %1422 = vmatpush.bf16.msra.mxu3 %v2060_v44 }
  0xed   :  { %v873_v0 = vadd.f32 0.0036580483, %v872_v45  ;;  %v884_v32 = vadd.f32 0.014752088, %v883_v58  ;;  %v1747_v3 = vclamps-f32 %v785_v59, 1.0  ;;  %1362 = vmatmul.bf16.vlgmr.msrb.gmra.mxu1 %v960_v63  ;;  %vm817_vm10 = vweird.f32 %v2079_v60 }
  0xee   :  { %v2434_v14 = vadd.f32 %v2403_v8, %v680_v62  ;;  %v849_v47 = vmul.f32 %v848_v12, %v2371_v40  ;;  %v2049_v8 = vld [vmem:[#allocation8 + $0x108] sm:$0xff]  ;;  %v814_v27 = vmul.f32 %v2079_v60, %v813_v17  ;;  %v836_v30 = vmul.f32 %v835_v48, %v2371_v40  ;;  %vm818_vm11 = vmor %vm816_vm9, %vm817_vm10 }
  0xef   :  { %v885_v13 = vmul.f32 %v884_v32, %v2401_v7  ;;  %v949_v15 = vadd.f32 1.0, %v1747_v3  ;;  %v874_v22 = vmul.f32 %v873_v0, %v2401_v7  ;;  %1412 = vmatpush.bf16.msra.mxu1 %v2049_v8  ;;  %v800_v41 = vmul.f32 %v799_v6, %v2321_v19 }
  0xf0   :  { %v2442_v28 = vmul.f32 0.70710677, %v2434_v14  ;;  %v2445_v33 = vadd.f32 1.0, %v849_v47  ;;  %v815_v36 = vadd.f32 %v2079_v60, %v814_v27  ;;  %vm821_vm12 = vcmp.eq.f32.partialorder %v820_v50, 8.507059e+37  ;;  %1423 = vmatpush.bf16.msra.mxu3 %v2059_v18 }
  0xf1   :  { %v886_v23 = vadd.f32 0.112945676, %v885_v13  ;;  %v955_v26 = vmul.f32 %v949_v15, %v697_v39  ;;  %v875_v38 = vadd.f32 0.05243302, %v874_v22  ;;  %v837_v56 = vadd.f32 0.18741608, %v836_v30 }
  0xf2   :  { %v908_v37 = vmul.f32 %v2442_v28, %v2442_v28  ;;  %2080 = vrcp.f32 %v2445_v33  ;;  %v819_v45 = vsel %vm818_vm11, %v2079_v60, %v815_v36  ;;  %v698_v60 = vmul.f32 0.5, %v2316_v11  ;;  %v2056_v30 = vld [vmem:[#allocation8 + $0x140] sm:$0xff] }
  0xf3   :  { %v681_v53 = vpop.f32.mrf.mxu2  ;;  %v887_v34 = vmul.f32 %v886_v23, %v2401_v7  ;;  %v961_v35 = vpack.c.bf16 %v955_v26, %v955_v26  ;;  %v824_v31 = vsel %vm821_vm12, %v823_v42, %v819_v45  ;;  %1413 = vmatpush.bf16.msra.mxu1 %v2048_v43  ;;  %v876_v55 = vmul.f32 %v875_v38, %v2401_v7 }
  0xf4   :  { %v2454_v49 = vmin.f32 %v908_v37, 16.0  ;;  %v825_v19 = vmul.f32 %v824_v31, %v800_v41  ;;  %v838_v61 = vmul.f32 %v837_v56, %v2371_v40  ;;  %v860_v40 = vand.u32 2147483647, %v2445_v33  ;;  %1424 = vmatpush.bf16.msra.mxu3 %v2058_v1  ;;  %v2057_v53 = vld [vmem:[#allocation8 + $0x148] sm:$0xff] }
  0xf5   :  { %v888_v46 = vadd.f32 0.4994258, %v887_v34  ;;  %1375 = vmatmul.bf16.vlgmr.msrb.gmra.mxu3 %v961_v35  ;;  %v877_v3 = vadd.f32 0.18741608, %v876_v55  ;;  %v862_v10 = vand.u32 2147483648, %v2445_v33  ;;  %vm856_vm14 = vweird.f32 %v2445_v33 }
  0xf6   :  { %v910_v51 = vmul.f32 2.1237322e-06, %v2454_v49  ;;  %v921_v52 = vmul.f32 3.8918573e-05, %v2454_v49  ;;  %v1748_v54 = vclamps-f32 %v825_v19, 1.0  ;;  %vm861_vm0 = vcmp.eq.f32.partialorder %v860_v40, 8.507059e+37 }
  0xf7   :  { %v889_v24 = vmul.f32 %v888_v46, %v2401_v7  ;;  %v839_v9 = vadd.f32 1.1283791, %v838_v61  ;;  %v878_v50 = vmul.f32 %v877_v3, %v2401_v7  ;;  %v863_v47 = vor.u32 1.1754944e-38, %v862_v10 }
  0xf8   :  { %v911_v58 = vadd.f32 0.00028619796, %v910_v51  ;;  %v2081_v59 = vpop.eup %2080  ;;  %v922_v62 = vadd.f32 0.001143296, %v921_v52  ;;  %v950_v63 = vadd.f32 1.0, %v1748_v54  ;;  %1425 = vmatpush.bf16.msra.mxu3 %v2057_v53  ;;  %v699_v44 = vmul.f32 0.5, %v2345_v5 }
  0xf9   :  { %v2460_v57 = vadd.f32 1.0, %v889_v24  ;;  %v852_v0 = vmul.f32 %v2081_v59, %v2445_v33  ;;  %vm857_vm13 = vweird.f32 %v2081_v59  ;;  %v840_v23 = vmul.f32 %v839_v9, %v2350_v16 }
  0xfa   :  { %v912_v32 = vmul.f32 %v911_v58, %v2454_v49  ;;  %v956_v2 = vmul.f32 %v950_v63, %v698_v60  ;;  %v923_v6 = vmul.f32 %v922_v62, %v2454_v49  ;;  %vm858_vm15 = vmor %vm856_vm14, %vm857_vm13  ;;  %v879_v7 = vadd.f32 1.1283791, %v878_v50 }
  0xfb   :  { %2082 = vrcp.f32 %v2460_v57  ;;  %v853_v39 = vsub.f32 1.0, %v852_v0  ;;  %v902_v34 = vand.u32 2147483648, %v2460_v57  ;;  %vm896_vm1 = vweird.f32 %v2460_v57 }
  0xfc   :  { %v962_v11 = vpack.c.bf16 %v956_v2, %v956_v2  ;;  %v924_v12 = vadd.f32 0.014752088, %v923_v6  ;;  %v913_v13 = vadd.f32 0.0036580483, %v912_v32  ;;  %v900_v16 = vand.u32 2147483647, %v2460_v57  ;;  %1426 = vmatpush.bf16.msra.mxu3 %v2056_v30 }
  0xfd   :  { %v854_v48 = vmul.f32 %v2081_v59, %v853_v39  ;;  %v903_v38 = vor.u32 1.1754944e-38, %v902_v34  ;;  %v880_v31 = vmul.f32 %v879_v7, %v2380_v4  ;;  %v700_v5 = vmul.f32 0.5, %v2361_v25 }
  0xfe   :  { %v925_v20 = vmul.f32 %v924_v12, %v2454_v49  ;;  %1388 = vmatmul.bf16.vlgmr.msrb.gmra.mxu0 %v962_v11  ;;  %v914_v29 = vmul.f32 %v913_v13, %v2454_v49  ;;  %vm901_vm4 = vcmp.eq.f32.partialorder %v900_v16, 8.507059e+37 }
  0xff   :  { %v855_v17 = vadd.f32 %v2081_v59, %v854_v48 }
 0x100   :  { %v926_v21 = vadd.f32 0.112945676, %v925_v20  ;;  %v915_v43 = vadd.f32 0.05243302, %v914_v29 }
 0x101   :  { %v2083_v15 = vpop.eup %2082  ;;  %v859_v8 = vsel %vm858_vm15, %v2081_v59, %v855_v17 }
 0x102   :  { %v892_v22 = vmul.f32 %v2083_v15, %v2460_v57  ;;  %v864_v26 = vsel %vm861_vm0, %v863_v47, %v859_v8  ;;  %v927_v35 = vmul.f32 %v926_v21, %v2454_v49  ;;  %vm897_vm2 = vweird.f32 %v2083_v15 }
 0x103   :  { %v865_v33 = vmul.f32 %v864_v26, %v840_v23  ;;  %vm898_vm3 = vmor %vm896_vm1, %vm897_vm2  ;;  %v916_v18 = vmul.f32 %v915_v43, %v2454_v49 }
 0x104   :  { %v893_v27 = vsub.f32 1.0, %v892_v22  ;;  %v928_v41 = vadd.f32 0.4994258, %v927_v35 }
 0x105   :  { %v1749_v37 = vclamps-f32 %v865_v33, 1.0  ;;  %v917_v58 = vadd.f32 0.18741608, %v916_v18 }
 0x106   :  { %v894_v36 = vmul.f32 %v2083_v15, %v893_v27  ;;  %v929_v46 = vmul.f32 %v928_v41, %v2454_v49 }
 0x107   :  { %v951_v45 = vadd.f32 1.0, %v1749_v37  ;;  %v918_v4 = vmul.f32 %v917_v58, %v2454_v49  ;;  %v701_v49 = vmul.f32 0.5, %v2434_v14 }
 0x108   :  { %v895_v42 = vadd.f32 %v2083_v15, %v894_v36  ;;  %v930_v51 = vadd.f32 1.0, %v929_v46 }
 0x109   :  { %v957_v19 = vmul.f32 %v951_v45, %v699_v44  ;;  %v919_v32 = vadd.f32 1.1283791, %v918_v4 }
 0x10a   :  { %v899_v56 = vsel %vm898_vm3, %v2083_v15, %v895_v42  ;;  %2084 = vrcp.f32 %v930_v51  ;;  %v942_v0 = vand.u32 2147483648, %v930_v51  ;;  %v940_v2 = vand.u32 2147483647, %v930_v51 }
 0x10b   :  { %v904_v24 = vsel %vm901_vm4, %v903_v38, %v899_v56  ;;  %v963_v54 = vpack.c.bf16 %v957_v19, %v957_v19  ;;  %vm936_vm6 = vweird.f32 %v930_v51  ;;  %v920_v25 = vmul.f32 %v919_v32, %v2442_v28  ;;  %v2073_v28 = vld [vmem:[%s2498_s4] ss:$0 sm:$0xff] }
 0x10c   :  { %v905_v52 = vmul.f32 %v904_v24, %v880_v31  ;;  %v943_v3 = vor.u32 1.1754944e-38, %v942_v0  ;;  %vm941_vm8 = vcmp.eq.f32.partialorder %v940_v2, 8.507059e+37 }
 0x10d   :  { %1401 = vmatmul.bf16.vlgmr.msrb.gmra.mxu2 %v963_v54 }
 0x10e   :  { %v1750_v55 = vclamps-f32 %v905_v52, 1.0 }
 0x110   :  { %v952_v57 = vadd.f32 1.0, %v1750_v55  ;;  %v2085_v61 = vpop.eup %2084 }
 0x111   :  { %v932_v60 = vmul.f32 %v2085_v61, %v930_v51  ;;  %vm937_vm5 = vweird.f32 %v2085_v61 }
 0x112   :  { %v958_v59 = vmul.f32 %v952_v57, %v700_v5  ;;  %vm938_vm7 = vmor %vm936_vm6, %vm937_vm5 }
 0x113   :  { %v933_v63 = vsub.f32 1.0, %v932_v60 }
 0x114   :  { %v964_v62 = vpack.c.bf16 %v958_v59, %v958_v59 }
 0x115   :  { %v934_v1 = vmul.f32 %v2085_v61, %v933_v63 }
 0x116   :  { %1414 = vmatmul.bf16.vlgmr.msra.gmra.mxu1 %v964_v62 }
 0x117   :  { %v935_v39 = vadd.f32 %v2085_v61, %v934_v1 }
 0x119   :  { %v939_v6 = vsel %vm938_vm7, %v2085_v61, %v935_v39 }
 0x11a   :  { %v944_v9 = vsel %vm941_vm8, %v943_v3, %v939_v6 }
 0x11b   :  { %v945_v40 = vmul.f32 %v944_v9, %v920_v25 }
 0x11d   :  { %v1751_v10 = vclamps-f32 %v945_v40, 1.0 }
 0x11f   :  { %v953_v11 = vadd.f32 1.0, %v1751_v10 }
 0x121   :  { %v959_v48 = vmul.f32 %v953_v11, %v701_v49 }
 0x123   :  { %v965_v12 = vpack.c.bf16 %v959_v48, %v959_v48 }
 0x125   :  { %1427 = vmatmul.bf16.vlgmr.msra.gmra.mxu3 %v965_v12 }
 0x16a   :  { %v1363_v13 = vpop.f32.mrf.mxu1 }
 0x16b   :  { %v1364_v21 = vadd.f32 %v2073_v28, %v1363_v13 }
 0x172   :  { %v1365_v53 = vpop.f32.mrf.mxu1 }
 0x178   :  { %v1376_v15 = vpop.f32.mrf.mxu3 }
 0x179   :  { %v1377_v14 = vadd.f32 %v1376_v15, %v1364_v21 }
 0x17b   :  { %v1389_v17 = vpop.f32.mrf.mxu0 }
 0x17c   :  { %v1390_v26 = vadd.f32 %v1389_v17, %v1377_v14 }
 0x180   :  { %v1378_v50 = vpop.f32.mrf.mxu3 }
 0x183   :  { %v1391_v20 = vpop.f32.mrf.mxu0 }
 0x190   :  { %v1402_v47 = vpop.f32.mrf.mxu2 }
 0x191   :  { %v1403_v27 = vadd.f32 %v1402_v47, %v1390_v26 }
 0x193   :  { %v1415_v22 = vpop.f32.mrf.mxu1 }
 0x194   :  { %v1416_v29 = vadd.f32 %v1415_v22, %v1403_v27 }
 0x198   :  { %v1404_v23 = vpop.f32.mrf.mxu2 }
 0x19b   :  { %v1417_v8 = vpop.f32.mrf.mxu1 }
 0x1a8   :  { %v1428_v30 = vpop.f32.mrf.mxu3 }
 0x1a9   :  { %v1429_v33 = vadd.f32 %v1428_v30, %v1416_v29 }
 0x1ab   :  { %1432 = vst [vmem:[#allocation10] sm:$0x3] %v1429_v33 }
 0x1ac   :  { %1443 = dma.vmem_to_hbm [thread:$0]  %s1439_s16, 32, %s1441_s19, [#allocation4]  }
 0x1b0   :  { %v1430_v7 = vpop.f32.mrf.mxu3 }
 0x1b1   :  { %2212 = dma.done.wait [#allocation4], 32  }
 0x1b2   :  { %2213 = vsyncadd [#allocation4], 4294967264 }
 0x1b3   :  { %1448 = vsyncpa [#allocation3], 1 }
 0x1b4   :  { %1449 = vsyncpa [#allocation6], 1 }
 0x1b5   :  { %1450 = vsyncpa [#allocation9], 1 }
 0x1b6   :  { %1451 = vsyncpa [#allocation4], 1 }

</bundles_post_ra>
